<compile_context>
chip_gen: v6e
topology: v6e:2x2x1
jax: 0.10.0
libtpu: 0.0.40
codegen_flags: <defaults>
</compile_context>

<pallas_src>
import functools

import jax
import jax.numpy as jnp
from jax import lax
from jax.experimental import pallas as pl
from jax.experimental.pallas import tpu as pltpu


def esl_kl_kernel(logits_ref, true_ref, kl_ref, *, std: float, num_bins: int,
                  lo: float, hi: float):
    # logits_ref: (tile_b, NB) native dtype (f32/bf16), cast in-kernel
    # true_ref  : (tile_b, 1)  f32 true scores
    # kl_ref    : (tile_b, 1)  f32 per-sample KL(soft_target || softmax(logits))
    logits = logits_ref[...].astype(jnp.float32)              # (tile_b, NB)
    true_s = true_ref[...]                                     # (tile_b, 1)

    # Bin centers generated in-kernel: lo, lo+step, ..., hi  (step exact: 0.5).
    step = (hi - lo) / (num_bins - 1)
    centers = lo + step * lax.broadcasted_iota(
        jnp.int32, (1, num_bins), 1).astype(jnp.float32)       # (1, NB)

    # ---- soft targets: Gaussian over bin centers, log-space, exact norm ----
    d = centers - true_s                                       # (tile_b, NB)
    t_logit = (d * d) * (-1.0 / (2.0 * std * std))
    t_max = jnp.max(t_logit, axis=-1, keepdims=True)           # (tile_b, 1)
    t_un = jnp.exp(t_logit - t_max)                            # (tile_b, NB)
    t_sum = jnp.sum(t_un, axis=-1, keepdims=True)              # >= 1
    soft_t = t_un / t_sum                                      # exact divide
    log_soft_t = (t_logit - t_max) - jnp.log(t_sum)            # finite everywhere

    # ---- log_softmax(logits) along the bin (lane) axis ----------------------
    l_max = jnp.max(logits, axis=-1, keepdims=True)
    lse = jnp.log(jnp.sum(jnp.exp(logits - l_max), axis=-1, keepdims=True)) + l_max
    log_probs = logits - lse                                   # (tile_b, NB)

    # soft_t underflows to an exact 0 for far bins while log_soft_t stays
    # finite, so the product is an exact 0 — no clamp / where needed.
    kl_ref[...] = jnp.sum(soft_t * (log_soft_t - log_probs),
                          axis=-1, keepdims=True)              # (tile_b, 1)


def esl_loss(logits, expected_scores, true_scores, class_weights,
             *, lambda_kl=0.9, lambda_mse=0.1, num_bins=21,
             score_range=(0.0, 10.0), std=0.3, max_tile_b=8192):
    B, NB = logits.shape
    assert NB == num_bins

    # Row tile: multiple of 8 sublanes and (for B >= 8) never larger than B, so
    # only the ragged tail block is partial.  Partial-block garbage rows are
    # row-local (all reductions are along the bin/lane axis) and their output
    # rows are clipped on store.
    tile_b = min(max_tile_b, max(8, (B // 8) * 8))
    grid = (pl.cdiv(B, tile_b),)

    true_col = true_scores.reshape(B, 1).astype(jnp.float32)   # tiny (4 B/sample)

    kernel = functools.partial(
        esl_kl_kernel, std=float(std), num_bins=num_bins,
        lo=float(score_range[0]), hi=float(score_range[1]))

    kl_col = pl.pallas_call(
        kernel,
        out_shape=jax.ShapeDtypeStruct((B, 1), jnp.float32),
        grid_spec=pl.GridSpec(
            grid=grid,
            in_specs=[
                pl.BlockSpec((tile_b, NB), lambda i: (i, 0)),   # logits, native layout
                pl.BlockSpec((tile_b, 1), lambda i: (i, 0)),    # true_scores column
            ],
            out_specs=pl.BlockSpec((tile_b, 1), lambda i: (i, 0)),
        ),
        compiler_params=pltpu.CompilerParams(
            dimension_semantics=("parallel",),       # v7x: shard row tiles across TCs
            vmem_limit_bytes=48 * 1024 * 1024,       # ~24 MiB used at tile_b=8192
        ),
    )(logits, true_col)

    kl_ps = kl_col[:, 0]

    # MSE + weighted scalar reductions are ~4 B/sample; keep them in the
    # wrapper so XLA fuses them and the kernel moves no redundant bytes.
    exp_f = expected_scores.astype(jnp.float32)
    true_f = true_scores.astype(jnp.float32)
    mse_ps = (exp_f - true_f) ** 2

    w = class_weights.astype(jnp.float32)
    w_sum = jnp.sum(w)
    wkl = jnp.sum(kl_ps * w) / w_sum
    wmse = jnp.sum(mse_ps * w) / w_sum
    total = lambda_kl * wkl + lambda_mse * wmse

    return {
        "total_loss": total,
        "kl_loss": wkl,
        "mse_loss": wmse,
        "kl_loss_per_sample": kl_ps,
        "mse_loss_per_sample": mse_ps,
    }


def _reference_jax(logits, expected_scores, true_scores, class_weights,
                   lambda_kl=0.9, lambda_mse=0.1, num_bins=21, std=0.3):
    """Plain-JAX reference mirroring the PyTorch module (fixed std)."""
    centers = jnp.linspace(0.0, 10.0, num_bins, dtype=jnp.float32)[None, :]
    true_c = true_scores[:, None].astype(jnp.float32)
    d = centers - true_c
    probs = jnp.exp(-(d * d) / (2.0 * std * std))
    soft_t = probs / jnp.sum(probs, axis=-1, keepdims=True)
    log_probs = jax.nn.log_softmax(logits.astype(jnp.float32), axis=-1)
    kl_elem = jnp.where(soft_t > 0,
                        soft_t * (jnp.log(jnp.maximum(soft_t, 1e-30)) - log_probs),
                        0.0)
    kl_ps = jnp.sum(kl_elem, axis=-1)
    mse_ps = (expected_scores - true_scores) ** 2
    w_sum = jnp.sum(class_weights)
    wkl = jnp.sum(kl_ps * class_weights) / w_sum
    wmse = jnp.sum(mse_ps * class_weights) / w_sum
    return lambda_kl * wkl + lambda_mse * wmse, wkl, wmse, kl_ps, mse_ps


def _check(out, ref, rtol=2e-3, atol=5e-4):
    ref_total, ref_kl, ref_mse, ref_kl_ps, ref_mse_ps = ref
    assert jnp.allclose(out["total_loss"], ref_total, rtol=rtol, atol=atol)
    assert jnp.allclose(out["kl_loss"], ref_kl, rtol=rtol, atol=atol)
    assert jnp.allclose(out["mse_loss"], ref_mse, rtol=rtol, atol=atol)
    assert jnp.allclose(out["kl_loss_per_sample"], ref_kl_ps, rtol=rtol, atol=atol)
    assert jnp.allclose(out["mse_loss_per_sample"], ref_mse_ps, rtol=rtol, atol=atol)


def _make_inputs(key, batch, num_bins):
    k1, k2, k3, k4 = jax.random.split(key, 4)
    logits = jax.random.normal(k1, (batch, num_bins), dtype=jnp.float32)
    true_scores = jax.random.uniform(k2, (batch,), minval=0.0, maxval=10.0,
                                     dtype=jnp.float32)
    expected_scores = jnp.clip(
        true_scores + 0.5 * jax.random.normal(k3, (batch,), dtype=jnp.float32),
        0.0, 10.0)
    class_weights = jax.random.uniform(k4, (batch,), minval=0.5, maxval=2.0,
                                       dtype=jnp.float32)
    return logits, expected_scores, true_scores, class_weights


if __name__ == "__main__":
    NUM_BINS = 21
    key = jax.random.PRNGKey(0)
    k_a, k_b = jax.random.split(key, 2)

    # Small case: B=8 -> single full (8, 21) block, grid=(1,).
    logits, exp_s, true_s, w = _make_inputs(k_a, 8, NUM_BINS)
    out = esl_loss(logits, exp_s, true_s, w,
                   lambda_kl=0.9, lambda_mse=0.1, num_bins=NUM_BINS)
    jax.block_until_ready(out)
    _check(out, _reference_jax(logits, exp_s, true_s, w, num_bins=NUM_BINS))

    # Multi-tile case: B=300 with 128-row tiles -> grid=(3,), ragged last block.
    logits2, exp_s2, true_s2, w2 = _make_inputs(k_b, 300, NUM_BINS)
    out2 = esl_loss(logits2, exp_s2, true_s2, w2,
                    lambda_kl=0.9, lambda_mse=0.1, num_bins=NUM_BINS,
                    max_tile_b=128)
    jax.block_until_ready(out2)
    ref2 = _reference_jax(logits2, exp_s2, true_s2, w2, num_bins=NUM_BINS)
    _check(out2, ref2)

    # Default tile path on the same data: tile_b=296, grid=(2,), ragged tail.
    out3 = esl_loss(logits2, exp_s2, true_s2, w2,
                    lambda_kl=0.9, lambda_mse=0.1, num_bins=NUM_BINS)
    jax.block_until_ready(out3)
    _check(out3, ref2)

    print("KERNEL_OK")
</pallas_src>

<mosaic_0001>
module attributes {stable_mosaic.version = 11 : i64} {
  func.func @esl_kl_kernel(%arg0: i32, %arg1: memref<8x21xf32, #tpu.memory_space<vmem>>, %arg2: memref<8x1xf32, #tpu.memory_space<vmem>>, %arg3: memref<8x1xf32, #tpu.memory_space<vmem>>) attributes {dimension_semantics = [#tpu.dimension_semantics<parallel>], iteration_bounds = array<i64: 1>, scalar_prefetch = 0 : i64, scratch_operands = 0 : i64, tpu.core_type = #tpu.core_type<tc>, window_params = [{transform_indices = @transform_0, window_bounds = array<i64: 8, 21>}, {transform_indices = @transform_1, window_bounds = array<i64: 8, 1>}, {transform_indices = @transform_2, window_bounds = array<i64: 8, 1>}]} {
    %c0 = arith.constant 0 : index
    %c0_0 = arith.constant 0 : index
    %0 = vector.load %arg1[%c0, %c0_0] : memref<8x21xf32, #tpu.memory_space<vmem>>, vector<8x21xf32>
    %c0_1 = arith.constant 0 : index
    %c0_2 = arith.constant 0 : index
    %1 = vector.load %arg2[%c0_1, %c0_2] : memref<8x1xf32, #tpu.memory_space<vmem>>, vector<8x1xf32>
    %2 = tpu.iota {dimensions = array<i32: 1>} : vector<1x21xi32>
    %3 = arith.sitofp %2 : vector<1x21xi32> to vector<1x21xf32>
    %cst = arith.constant 5.000000e-01 : f32
    %4 = vector.broadcast %cst : f32 to vector<1x21xf32>
    %5 = arith.mulf %4, %3 : vector<1x21xf32>
    %cst_3 = arith.constant 0.000000e+00 : f32
    %6 = vector.broadcast %cst_3 : f32 to vector<1x21xf32>
    %7 = arith.addf %6, %5 : vector<1x21xf32>
    %8 = vector.broadcast %7 : vector<1x21xf32> to vector<8x21xf32>
    %9 = vector.broadcast %1 : vector<8x1xf32> to vector<8x21xf32>
    %10 = arith.subf %8, %9 : vector<8x21xf32>
    %11 = arith.mulf %10, %10 : vector<8x21xf32>
    %cst_4 = arith.constant -5.55555534 : f32
    %12 = vector.broadcast %cst_4 : f32 to vector<8x21xf32>
    %13 = arith.mulf %11, %12 : vector<8x21xf32>
    %cst_5 = arith.constant dense<0xFF800000> : vector<8xf32>
    %14 = vector.multi_reduction <maximumf>, %13, %cst_5 [1] : vector<8x21xf32> to vector<8xf32>
    %15 = vector.shape_cast %14 : vector<8xf32> to vector<8x1xf32>
    %16 = vector.broadcast %15 : vector<8x1xf32> to vector<8x21xf32>
    %17 = arith.subf %13, %16 : vector<8x21xf32>
    %18 = math.exp %17 : vector<8x21xf32>
    %cst_6 = arith.constant dense<0.000000e+00> : vector<8xf32>
    %19 = vector.multi_reduction <add>, %18, %cst_6 [1] : vector<8x21xf32> to vector<8xf32>
    %20 = vector.shape_cast %19 : vector<8xf32> to vector<8x1xf32>
    %21 = vector.broadcast %20 : vector<8x1xf32> to vector<8x21xf32>
    %22 = arith.divf %18, %21 : vector<8x21xf32>
    %23 = vector.broadcast %15 : vector<8x1xf32> to vector<8x21xf32>
    %24 = arith.subf %13, %23 : vector<8x21xf32>
    %25 = math.log %20 : vector<8x1xf32>
    %26 = vector.broadcast %25 : vector<8x1xf32> to vector<8x21xf32>
    %27 = arith.subf %24, %26 : vector<8x21xf32>
    %cst_7 = arith.constant dense<0xFF800000> : vector<8xf32>
    %28 = vector.multi_reduction <maximumf>, %0, %cst_7 [1] : vector<8x21xf32> to vector<8xf32>
    %29 = vector.shape_cast %28 : vector<8xf32> to vector<8x1xf32>
    %30 = vector.broadcast %29 : vector<8x1xf32> to vector<8x21xf32>
    %31 = arith.subf %0, %30 : vector<8x21xf32>
    %32 = math.exp %31 : vector<8x21xf32>
    %cst_8 = arith.constant dense<0.000000e+00> : vector<8xf32>
    %33 = vector.multi_reduction <add>, %32, %cst_8 [1] : vector<8x21xf32> to vector<8xf32>
    %34 = vector.shape_cast %33 : vector<8xf32> to vector<8x1xf32>
    %35 = math.log %34 : vector<8x1xf32>
    %36 = arith.addf %35, %29 : vector<8x1xf32>
    %37 = vector.broadcast %36 : vector<8x1xf32> to vector<8x21xf32>
    %38 = arith.subf %0, %37 : vector<8x21xf32>
    %39 = arith.subf %27, %38 : vector<8x21xf32>
    %40 = arith.mulf %22, %39 : vector<8x21xf32>
    %cst_9 = arith.constant dense<0.000000e+00> : vector<8xf32>
    %41 = vector.multi_reduction <add>, %40, %cst_9 [1] : vector<8x21xf32> to vector<8xf32>
    %42 = vector.shape_cast %41 : vector<8xf32> to vector<8x1xf32>
    %c0_10 = arith.constant 0 : index
    %c0_11 = arith.constant 0 : index
    %43 = vector.load %arg3[%c0_10, %c0_11] : memref<8x1xf32, #tpu.memory_space<vmem>>, vector<8x1xf32>
    tpu.vector_store %arg3[%c0_10, %c0_11], %42 {strides = array<i32>} : memref<8x1xf32, #tpu.memory_space<vmem>>, vector<8x1xf32>,
    return
  }
  func.func @transform_0(%arg0: i32) -> (i32, i32) {
    %c0_i32 = arith.constant 0 : i32
    %c0_i32_0 = arith.constant 0 : i32
    return %arg0, %c0_i32 : i32, i32
  }
  func.func @transform_1(%arg0: i32) -> (i32, i32) {
    %c0_i32 = arith.constant 0 : i32
    %c0_i32_0 = arith.constant 0 : i32
    return %arg0, %c0_i32 : i32, i32
  }
  func.func @transform_2(%arg0: i32) -> (i32, i32) {
    %c0_i32 = arith.constant 0 : i32
    %c0_i32_0 = arith.constant 0 : i32
    return %arg0, %c0_i32 : i32, i32
  }
}

</mosaic_0001>

<bundles_post_ra>
// kernel: tpu_custom_call.1
= control target key start
LH: loop header
LB: loop body
LE: loop exit
PB: predicated region body
PF: predicated region fallthrough
CT: control target
= control target key end

     0   :  { %v77_v0 = vmov 0   ;;  %vm26_vm0 = vcmask 171008   ;;  %v13_v4 = vlaneseq  ;;  %vm59_vm1 = vcmask 7168   ;;  %s107_s1 = inlined_call_operand.vmem [shape: f32[8,1], index: 1, kind: input, shape index: {}]   ;;  %s108_s0 = inlined_call_operand.vmem [shape: f32[8,21], index: 0, kind: input, shape index: {}]   ;;  %s109_s2 = inlined_call_operand.vmem [shape: f32[8,1], index: 2, kind: output, shape index: {}]  }
   0x1   :  { %66 = vset.pattern.permute.xlu0 %v77_v0  ;;  %v12_v1 = vld [vmem:[%s107_s1] sm:$0xff] }
   0x2   :  { %20 = vperm.xlu0 %66, %v12_v1   ;;  %v11_v2 = vld [vmem:[%s108_s0] sm:$0xff]  ;;  %v14_v5 = vand.u32 127, %v13_v4 }
   0x3   :  { %v41_v3 = vsel %vm26_vm0, %v11_v2, -inf }
   0x4   :  { %v15_v6 = vcvt.s32.f32 %v14_v5 }
   0x6   :  { %v16_v7 = vmul.f32 0.5, %v15_v6 }
  0x21   :  { %42 = vmax.xlane.f32.xlu0 %v41_v3 }
  0x7d   :  { %v21_v8 = vpop.permute.xlu0 %20 }
  0x7e   :  { %v23_v9 = vsub.f32 %v16_v7, %v21_v8 }
  0x80   :  { %v24_v10 = vmul.f32 %v23_v9, %v23_v9 }
  0x82   :  { %v25_v11 = vmul.f32 -5.5555553, %v24_v10 }
  0x84   :  { %v27_v12 = vsel %vm26_vm0, %v25_v11, -inf }
  0x85   :  { %28 = vmax.xlane.f32.xlu1 %v27_v12 }
  0xaa   :  { %v43_v13 = vpop.xlane.xlu0 %42 }
  0xab   :  { %v44_v14 = vsub.f32 %v11_v2, %v43_v13 }
  0xad   :  { %v45_v15 = vmul.f32 1.442695, %v44_v14 }
  0xaf   :  { %67 = vpow2.f32 %v45_v15 }
  0xbc   :  { %v68_v16 = vpop.eup %67 }
  0xbd   :  { %v47_v17 = vsel %vm26_vm0, %v68_v16, 0.0 }
  0xbe   :  { %48 = vadd.xlane.f32.xlu1 %v47_v17 }
 0x10e   :  { %v29_v18 = vpop.xlane.xlu1 %28 }
 0x10f   :  { %v30_v19 = vsub.f32 %v25_v11, %v29_v18 }
 0x111   :  { %v31_v20 = vmul.f32 1.442695, %v30_v19 }
 0x113   :  { %69 = vpow2.f32 %v31_v20 }
 0x120   :  { %v70_v21 = vpop.eup %69 }
 0x121   :  { %v33_v22 = vsel %vm26_vm0, %v70_v21, 0.0 }
 0x122   :  { %34 = vadd.xlane.f32.xlu1 %v33_v22 }
 0x147   :  { %v49_v23 = vpop.xlane.xlu1 %48 }
 0x148   :  { %71 = vlog2.f32 %v49_v23 }
 0x155   :  { %v72_v25 = vpop.eup %71 }
 0x156   :  { %v51_v26 = vmul.f32 0.6931472, %v72_v25 }
 0x158   :  { %v52_v27 = vadd.f32 %v51_v26, %v43_v13 }
 0x15a   :  { %v53_v32 = vsub.f32 %v11_v2, %v52_v27 }
 0x1ab   :  { %v35_v24 = vpop.xlane.xlu1 %34 }
 0x1ac   :  { %73 = vlog2.f32 %v35_v24 }
 0x1ad   :  { %75 = vrcp.f32 %v35_v24 }
 0x1b9   :  { %v74_v28 = vpop.eup %73 }
 0x1ba   :  { %v39_v29 = vmul.f32 0.6931472, %v74_v28  ;;  %v76_v30 = vpop.eup %75 }
 0x1bb   :  { %v37_v33 = vmul.f32 %v76_v30, %v70_v21 }
 0x1bc   :  { %v40_v31 = vsub.f32 %v30_v19, %v39_v29 }
 0x1be   :  { %v54_v34 = vsub.f32 %v40_v31, %v53_v32 }
 0x1c0   :  { %v55_v35 = vmul.f32 %v54_v34, %v37_v33 }
 0x1c2   :  { %v56_v36 = vsel %vm26_vm0, %v55_v35, 0.0 }
 0x1c3   :  { %57 = vadd.xlane.f32.xlu1 %v56_v36 }
 0x24c   :  { %v58_v37 = vpop.xlane.xlu1 %57 }
 0x24d   :  { %60 = vst.msk [vmem:[%s109_s2] sm:$0xff] %vm59_vm1, %v58_v37 }

</bundles_post_ra>
